<compile_context>
chip_gen: v5e
topology: v5e:2x2
jax: 0.10.0
libtpu: 0.0.40
codegen_flags: <defaults>
</compile_context>

<pallas_src>
import jax
import jax.numpy as jnp
from jax.experimental import pallas as pl
from jax.experimental.pallas import tpu as pltpu


def dwt_kernel(x_ref, rbd_ref, cc_ref, o_ref):
    # x_ref:   (1, Cb, H, W)
    # rbd_ref: (Cb*2Ho, Cb*H)   block-diagonal fused row transform
    # cc_ref:  (W, 2Wo)         fused column transform (includes the 0.5)
    # o_ref:   (1, 4, Cb, Ho, Wo)
    _, cb, h, w = x_ref.shape
    ho, wo = h // 2, w // 2

    x = x_ref[0, :, :, :].astype(rbd_ref.dtype)        # (Cb, H, W)
    xf = x.reshape(cb * h, w)                          # fold channels into M

    # Columns: each input row -> [x @ Cp | x @ Cm]      (Cb*H, 2Wo)
    y = jnp.dot(xf, cc_ref[...], preferred_element_type=jnp.float32)
    # Rows: block-diagonal fused Haar row transform     (Cb*2Ho, 2Wo)
    t = jnp.dot(rbd_ref[...], y, preferred_element_type=jnp.float32)

    t = t.reshape(cb, 2 * ho, 2 * wo)                  # quadrants per channel
    o_ref[0, 0, :, :, :] = t[:, :ho, :wo].astype(o_ref.dtype)   # LL
    o_ref[0, 1, :, :, :] = t[:, :ho, wo:].astype(o_ref.dtype)   # HL
    o_ref[0, 2, :, :, :] = t[:, ho:, :wo].astype(o_ref.dtype)   # LH
    o_ref[0, 3, :, :, :] = t[:, ho:, wo:].astype(o_ref.dtype)   # HH


def dwt(x, *, max_row_block=512):
    """Pallas DWT. x: (N, C, H, W) -> (N, 4*C, H//2, W//2)."""
    N, C, H, W = x.shape
    assert H % 2 == 0 and W % 2 == 0
    Ho, Wo = H // 2, W // 2

    # bf16 inputs stay bf16 into the MXU (constants 0/±0.5/±1 are exact in
    # bf16); everything else computes in f32.  Accumulation is always f32.
    compute_dt = jnp.bfloat16 if x.dtype == jnp.bfloat16 else jnp.float32

    # Channel block: fold channels into the matmul M dimension (target
    # M = Cb*H ~ max_row_block) to fill the MXU and amortize per-step overhead,
    # while bounding the block-diagonal constant to (max_row_block)^2 elements.
    # TODO(synk): for very large H/W (>~1k) also tile H/W inside the grid so the
    # O(H^2)+O(W^2) constants stay within v7x's 64 MiB VMEM.
    target = max(1, max_row_block // H)
    cb = 1
    for d in range(1, C + 1):
        if C % d == 0 and d <= target:
            cb = d

    # Fused constant matrices (deterministic, no learned params).
    ih = jnp.arange(H)
    io = jnp.arange(Ho)
    re = (ih[None, :] == 2 * io[:, None]).astype(compute_dt)       # (Ho, H) even rows
    ro = (ih[None, :] == 2 * io[:, None] + 1).astype(compute_dt)   # (Ho, H) odd rows
    r_comb = jnp.concatenate([re + ro, ro - re], axis=0)           # (2Ho, H)
    r_bd = jnp.kron(jnp.eye(cb, dtype=compute_dt), r_comb)         # (Cb*2Ho, Cb*H)

    iw = jnp.arange(W)
    jo = jnp.arange(Wo)
    ce = (iw[:, None] == 2 * jo[None, :]).astype(compute_dt)       # (W, Wo) even cols
    co = (iw[:, None] == 2 * jo[None, :] + 1).astype(compute_dt)   # (W, Wo) odd cols
    c_comb = (0.5 * jnp.concatenate([ce + co, co - ce], axis=1)).astype(compute_dt)  # (W, 2Wo)

    grid = (N, C // cb)

    # Explicit VMEM budget (double-buffered blocks + constants + headroom).
    itemsize = jnp.dtype(x.dtype).itemsize
    cdsize = jnp.dtype(compute_dt).itemsize
    in_blk = cb * H * W * itemsize
    out_blk = 4 * cb * Ho * Wo * itemsize
    const_b = (cb * H) * (cb * H) * cdsize + W * (2 * Wo) * cdsize
    vmem_need = 2 * (in_blk + out_blk + const_b) + (8 << 20)
    vmem_limit = int(min(max(vmem_need, 16 << 20), 48 << 20))

    # Advisory cost estimate: memory-bound op (read + write) + two matmuls/step.
    flops = (2 * N * C * H * W * (2 * Wo)              # column matmuls
             + 2 * N * C * cb * H * H * (2 * Wo))      # block-diag row matmuls
    bytes_accessed = (N * C * H * W * itemsize
                      + N * 4 * C * Ho * Wo * itemsize
                      + (cb * H) ** 2 * cdsize + W * 2 * Wo * cdsize)

    out = pl.pallas_call(
        dwt_kernel,
        out_shape=jax.ShapeDtypeStruct((N, 4, C, Ho, Wo), x.dtype),
        grid_spec=pltpu.PrefetchScalarGridSpec(
            num_scalar_prefetch=0,
            grid=grid,
            in_specs=[
                pl.BlockSpec((1, cb, H, W), lambda n, c: (n, c, 0, 0)),
                pl.BlockSpec((cb * 2 * Ho, cb * H), lambda n, c: (0, 0)),
                pl.BlockSpec((W, 2 * Wo), lambda n, c: (0, 0)),
            ],
            out_specs=pl.BlockSpec((1, 4, cb, Ho, Wo),
                                   lambda n, c: (n, 0, c, 0, 0)),
        ),
        compiler_params=pltpu.CompilerParams(
            dimension_semantics=("parallel", "parallel"),
            vmem_limit_bytes=vmem_limit),
        cost_estimate=pl.CostEstimate(flops=flops, transcendentals=0,
                                      bytes_accessed=bytes_accessed),
    )(x, r_bd, c_comb)

    # (N, 4, Cb-blocks..., Ho, Wo) -> (N, 4C, Ho, Wo): pure reshape, matches
    # torch.cat((LL, HL, LH, HH), dim=1).
    return out.reshape(N, 4 * C, Ho, Wo)


def dwt_ref(x):
    """Pure-JAX reference mirroring the PyTorch dwt_init."""
    x01 = x[:, :, 0::2, :] / 2
    x02 = x[:, :, 1::2, :] / 2
    x1 = x01[:, :, :, 0::2]
    x2 = x02[:, :, :, 0::2]
    x3 = x01[:, :, :, 1::2]
    x4 = x02[:, :, :, 1::2]
    x_LL = x1 + x2 + x3 + x4
    x_HL = -x1 - x2 + x3 + x4
    x_LH = -x1 + x2 - x3 + x4
    x_HH = x1 - x2 - x3 + x4
    return jnp.concatenate((x_LL, x_HL, x_LH, x_HH), axis=1)


if __name__ == "__main__":
    key = jax.random.PRNGKey(0)
    x = jax.random.normal(key, (2, 4, 16, 16), dtype=jnp.float32)

    out = jax.block_until_ready(dwt(x))
    ref = dwt_ref(x)

    assert out.shape == ref.shape == (2, 16, 8, 8), out.shape
    assert jnp.allclose(out, ref, atol=1e-5, rtol=1e-5), "mismatch vs reference"

    print("KERNEL_OK")
</pallas_src>

<mosaic_0001>
module attributes {stable_mosaic.version = 11 : i64} {
  func.func @dwt_kernel(%arg0: i32, %arg1: i32, %arg2: memref<1x4x16x16xf32, #tpu.memory_space<vmem>>, %arg3: memref<64x64xf32, #tpu.memory_space<vmem>>, %arg4: memref<16x16xf32, #tpu.memory_space<vmem>>, %arg5: memref<1x4x4x8x8xf32, #tpu.memory_space<vmem>>) attributes {dimension_semantics = [#tpu.dimension_semantics<parallel>, #tpu.dimension_semantics<parallel>], iteration_bounds = array<i64: 2, 1>, scalar_prefetch = 0 : i64, scratch_operands = 0 : i64, tpu.core_type = #tpu.core_type<tc>, window_params = [{transform_indices = @transform_0, window_bounds = array<i64: 1, 4, 16, 16>}, {pipeline_mode = #tpu.pipeline_mode<synchronous>, transform_indices = @transform_1, window_bounds = array<i64: 64, 64>}, {pipeline_mode = #tpu.pipeline_mode<synchronous>, transform_indices = @transform_2, window_bounds = array<i64: 16, 16>}, {transform_indices = @transform_3, window_bounds = array<i64: 1, 4, 4, 8, 8>}]} {
    %c0 = arith.constant 0 : index
    %c0_0 = arith.constant 0 : index
    %c0_1 = arith.constant 0 : index
    %c0_2 = arith.constant 0 : index
    %0 = vector.load %arg2[%c0, %c0_0, %c0_1, %c0_2] : memref<1x4x16x16xf32, #tpu.memory_space<vmem>>, vector<1x4x16x16xf32>
    %1 = vector.shape_cast %0 : vector<1x4x16x16xf32> to vector<4x16x16xf32>
    %2 = vector.shape_cast %1 : vector<4x16x16xf32> to vector<64x16xf32>
    %c0_3 = arith.constant 0 : index
    %c0_4 = arith.constant 0 : index
    %3 = vector.load %arg4[%c0_3, %c0_4] : memref<16x16xf32, #tpu.memory_space<vmem>>, vector<16x16xf32>
    %cst = arith.constant dense<0.000000e+00> : vector<64x16xf32>
    %4 = tpu.matmul %2, %3, %cst {dimension_numbers = #tpu.dot_dimension_numbers<[1], [0], [0], [1], [0, 0, 1, 1], [], []>} : vector<64x16xf32>, vector<16x16xf32>, vector<64x16xf32> -> vector<64x16xf32>
    %c0_5 = arith.constant 0 : index
    %c0_6 = arith.constant 0 : index
    %5 = vector.load %arg3[%c0_5, %c0_6] : memref<64x64xf32, #tpu.memory_space<vmem>>, vector<64x64xf32>
    %cst_7 = arith.constant dense<0.000000e+00> : vector<64x16xf32>
    %6 = tpu.matmul %5, %4, %cst_7 {dimension_numbers = #tpu.dot_dimension_numbers<[1], [0], [0], [1], [0, 0, 1, 1], [], []>} : vector<64x64xf32>, vector<64x16xf32>, vector<64x16xf32> -> vector<64x16xf32>
    %7 = vector.shape_cast %6 : vector<64x16xf32> to vector<4x16x16xf32>
    %8 = vector.extract_strided_slice %7 {offsets = [0, 0, 0], sizes = [4, 8, 8], strides = [1, 1, 1]} : vector<4x16x16xf32> to vector<4x8x8xf32>
    %c0_8 = arith.constant 0 : index
    %c0_9 = arith.constant 0 : index
    %c0_10 = arith.constant 0 : index
    %c0_11 = arith.constant 0 : index
    %c0_12 = arith.constant 0 : index
    %9 = vector.load %arg5[%c0_8, %c0_9, %c0_10, %c0_11, %c0_12] : memref<1x4x4x8x8xf32, #tpu.memory_space<vmem>>, vector<1x1x4x8x8xf32>
    %10 = vector.shape_cast %9 : vector<1x1x4x8x8xf32> to vector<4x8x8xf32>
    %11 = vector.shape_cast %8 : vector<4x8x8xf32> to vector<1x1x4x8x8xf32>
    tpu.vector_store %arg5[%c0_8, %c0_9, %c0_10, %c0_11, %c0_12], %11 {strides = array<i32>} : memref<1x4x4x8x8xf32, #tpu.memory_space<vmem>>, vector<1x1x4x8x8xf32>,
    %12 = vector.extract_strided_slice %7 {offsets = [0, 0, 8], sizes = [4, 8, 8], strides = [1, 1, 1]} : vector<4x16x16xf32> to vector<4x8x8xf32>
    %c0_13 = arith.constant 0 : index
    %c1 = arith.constant 1 : index
    %c0_14 = arith.constant 0 : index
    %c0_15 = arith.constant 0 : index
    %c0_16 = arith.constant 0 : index
    %13 = vector.load %arg5[%c0_13, %c1, %c0_14, %c0_15, %c0_16] : memref<1x4x4x8x8xf32, #tpu.memory_space<vmem>>, vector<1x1x4x8x8xf32>
    %14 = vector.shape_cast %13 : vector<1x1x4x8x8xf32> to vector<4x8x8xf32>
    %15 = vector.shape_cast %12 : vector<4x8x8xf32> to vector<1x1x4x8x8xf32>
    tpu.vector_store %arg5[%c0_13, %c1, %c0_14, %c0_15, %c0_16], %15 {strides = array<i32>} : memref<1x4x4x8x8xf32, #tpu.memory_space<vmem>>, vector<1x1x4x8x8xf32>,
    %16 = vector.extract_strided_slice %7 {offsets = [0, 8, 0], sizes = [4, 8, 8], strides = [1, 1, 1]} : vector<4x16x16xf32> to vector<4x8x8xf32>
    %c0_17 = arith.constant 0 : index
    %c2 = arith.constant 2 : index
    %c0_18 = arith.constant 0 : index
    %c0_19 = arith.constant 0 : index
    %c0_20 = arith.constant 0 : index
    %17 = vector.load %arg5[%c0_17, %c2, %c0_18, %c0_19, %c0_20] : memref<1x4x4x8x8xf32, #tpu.memory_space<vmem>>, vector<1x1x4x8x8xf32>
    %18 = vector.shape_cast %17 : vector<1x1x4x8x8xf32> to vector<4x8x8xf32>
    %19 = vector.shape_cast %16 : vector<4x8x8xf32> to vector<1x1x4x8x8xf32>
    tpu.vector_store %arg5[%c0_17, %c2, %c0_18, %c0_19, %c0_20], %19 {strides = array<i32>} : memref<1x4x4x8x8xf32, #tpu.memory_space<vmem>>, vector<1x1x4x8x8xf32>,
    %20 = vector.extract_strided_slice %7 {offsets = [0, 8, 8], sizes = [4, 8, 8], strides = [1, 1, 1]} : vector<4x16x16xf32> to vector<4x8x8xf32>
    %c0_21 = arith.constant 0 : index
    %c3 = arith.constant 3 : index
    %c0_22 = arith.constant 0 : index
    %c0_23 = arith.constant 0 : index
    %c0_24 = arith.constant 0 : index
    %21 = vector.load %arg5[%c0_21, %c3, %c0_22, %c0_23, %c0_24] : memref<1x4x4x8x8xf32, #tpu.memory_space<vmem>>, vector<1x1x4x8x8xf32>
    %22 = vector.shape_cast %21 : vector<1x1x4x8x8xf32> to vector<4x8x8xf32>
    %23 = vector.shape_cast %20 : vector<4x8x8xf32> to vector<1x1x4x8x8xf32>
    tpu.vector_store %arg5[%c0_21, %c3, %c0_22, %c0_23, %c0_24], %23 {strides = array<i32>} : memref<1x4x4x8x8xf32, #tpu.memory_space<vmem>>, vector<1x1x4x8x8xf32>,
    return
  }
  func.func @transform_0(%arg0: i32, %arg1: i32) -> (i32, i32, i32, i32) {
    %c0_i32 = arith.constant 0 : i32
    %c0_i32_0 = arith.constant 0 : i32
    %c0_i32_1 = arith.constant 0 : i32
    return %arg0, %arg1, %c0_i32, %c0_i32_0 : i32, i32, i32, i32
  }
  func.func @transform_1(%arg0: i32, %arg1: i32) -> (i32, i32) {
    %c0_i32 = arith.constant 0 : i32
    %c0_i32_0 = arith.constant 0 : i32
    %c0_i32_1 = arith.constant 0 : i32
    return %c0_i32, %c0_i32_0 : i32, i32
  }
  func.func @transform_2(%arg0: i32, %arg1: i32) -> (i32, i32) {
    %c0_i32 = arith.constant 0 : i32
    %c0_i32_0 = arith.constant 0 : i32
    %c0_i32_1 = arith.constant 0 : i32
    return %c0_i32, %c0_i32_0 : i32, i32
  }
  func.func @transform_3(%arg0: i32, %arg1: i32) -> (i32, i32, i32, i32, i32) {
    %c0_i32 = arith.constant 0 : i32
    %c0_i32_0 = arith.constant 0 : i32
    %c0_i32_1 = arith.constant 0 : i32
    %c0_i32_2 = arith.constant 0 : i32
    return %arg0, %c0_i32, %arg1, %c0_i32_0, %c0_i32_1 : i32, i32, i32, i32, i32
  }
}

</mosaic_0001>

<bundles_post_ra>
// kernel: tpu_custom_call.1
= control target key start
LH: loop header
LB: loop body
LE: loop exit
PB: predicated region body
PF: predicated region fallthrough
CT: control target
= control target key end

     0   :  { %8 = vsyncpa [#allocation3], 0  ;;  %s1130_s0 = inlined_call_operand.hbm [shape: f32[2,4,16,16], index: 0, kind: input, shape index: {}]   ;;  %s1131_s1 = inlined_call_operand.hbm [shape: f32[64,64], index: 1, kind: input, shape index: {}]   ;;  %s1132_s2 = inlined_call_operand.hbm [shape: f32[16,16], index: 2, kind: input, shape index: {}]   ;;  %s1133_s3 = inlined_call_operand.hbm [shape: f32[2,4,4,8,8], index: 3, kind: output, shape index: {}]  }
   0x1   :  { %10 = vsyncpa [#allocation3 + $0x1], 0 }
   0x2   :  { %11 = vsyncpa [#allocation6], 0 }
   0x3   :  { %12 = vsyncpa [#allocation4], 0 }
   0x4   :  { %14 = vsyncpa [#allocation4 + $0x1], 0  ;;  %s923_s12 = smov 0   ;;  %s925_s13 = smov 0  }
   0x5   :  { %s927_s14 = smov 0   ;;  %s929_s15 = smov 0  }
   0x6   :  { %s931_s16 = smov 0   ;;  %s933_s17 = smov 0  }
   0x7 LB: > { %s571_s18 = sadd.s32 4294967295, %s894_s17   ;;  %s572_s19 = sadd.s32 4294967294, %s894_s17   ;;  %s894_s17 = sphi %s933_s17, %s20_s17   ;;  %s890_s16 = sphi %s931_s16, %s1143_s16   ;;  %s886_s15 = sphi %s929_s15, %s1142_s15   ;;  %s882_s14 = sphi %s927_s14, %s1141_s14   ;;  %s878_s13 = sphi %s925_s13, %s1140_s13   ;;  %s874_s12 = sphi %s923_s12, %s1139_s12  }
   0x8   : > { %p54_p0 = scmp.ne.s32.totalorder %s878_s13, %s874_s12  ;;  %p959_p1 = scmp.eq.s32.totalorder %s571_s18, 0 }
   0x9   : > { %p128_p2 = scmp.eq.s32.totalorder %s572_s19, 1  ;;  %p573_p4 = scmp.ge.s32.totalorder %s894_s17, 1 }
   0xa   : > { %p965_p3 = por %p959_p1, %p54_p0  ;;  %p135_p6 = scmp.lt.s32.totalorder %s894_s17, 3 }
   0xb   : > { %p970_p5 = por %p128_p2, %p54_p0  ;;  %s146_s25 = sshll.u32 %s1131_s1, 4  ;;  %s147_s25 = int_to_ptr.hbm [resolvable:$true] %s146_s25 }
   0xc   : > { %p978_p7 = pnand %p573_p4, %p135_p6  ;;  %s896_s27 = smov [#allocation5]  }
   0xd   : > { %s148_s28 = sshll.u32 %s896_s27, 4  ;;  %p576_p10 = scmp.ge.s32.totalorder %s894_s17, 2  ;;  %s149_s28 = int_to_ptr.vmem [resolvable:$true] %s148_s28 }
   0xe   : > { %p642_p8 = pneg %p978_p7  ;;  %s160_s4 = sshll.u32 %s1132_s2, 4  ;;  %s161_s4 = int_to_ptr.hbm [resolvable:$true] %s160_s4 }
   0xf   : > { %s897_s5 = smov 128   ;;  %s898_s6 = smov 8  }
  0x10   : > { %p643_p9 = pnand %p642_p8, %p959_p1  ;;  %s899_s7 = smov [#allocation7]  }
  0x11   : > { %s162_s8 = sshll.u32 %s899_s7, 4  ;;  %p122_p11 = scmp.eq.s32.totalorder %s571_s18, 1  ;;  %s163_s8 = int_to_ptr.vmem [resolvable:$true] %s162_s8 }
  0x12   : > { %645 = dma.hbm_to_vmem [thread:$0]  (!%p643_p9), %s147_s25, 1024, %s149_s28, [#allocation6], %s897_s5, %s897_s5, %s898_s6  }
  0x13   : > { %648 = dma.hbm_to_vmem [thread:$0]  (!%p643_p9), %s161_s4, 256, %s163_s8, [#allocation6], %s897_s5, %s897_s5, %s898_s6  }
  0x14   : > { %s32_s9 = sadd.s32 1, %s890_s16  ;;  %s41_s10 = sadd.s32 1, %s882_s14 }
  0x15   : > { %p34_p12 = scmp.ge.s32.totalorder %s32_s9, 2  ;;  %p48_p13 = scmp.ne.s32.totalorder %s882_s14, %s878_s13 }
  0x16   : > { %p49_p0 = scmp.eq.s32.totalorder %s894_s17, 0  ;;  %p659_p4 = scmp.lt.s32.totalorder %s894_s17, 2 }
  0x17   : > { %s1145_s9 = smov (%p34_p12, %s32_s9), 0  ;;  %p1005_p2 = por %p122_p11, %p48_p13 }
  0x18   : > { %s36_s19 = ssub.s32 %s890_s16, %s1145_s9  ;;  %s176_s23 = sand.u32 1, %s882_s14  }
  0x19   : > { %p39_p6 = scmp.eq.s32.totalorder %s36_s19, 0  ;;  %p50_p8 = por %p49_p0, %p48_p13 }
  0x1a   : > { %s577_s24 = sshll.u32 %s176_s23, 6  ;;  %s618_s18 = sshll.u32 %s890_s16, 6 }
  0x1b   : > { %s1015_s25 = scalar_select %p39_p6, %s882_s14, %s41_s10  }
  0x1c   : > { %s188_s29 = scalar_lea.hbm %s1130_s0, %s618_s18  ;;  %s180_s4 = scalar_lea.vmem [#allocation2], %s577_s24 }
  0x1d   : > { %s189_s30 = sshll.u32 %s188_s29, 4  ;;  %s191_s7 = sshll.u32 %s180_s4, 4  ;;  %s190_s30 = int_to_ptr.hbm [resolvable:$true] %s189_s30  ;;  %s192_s7 = int_to_ptr.vmem [resolvable:$true] %s191_s7 }
  0x1e   : > { %p650_p9 = pnand %p659_p4, %p50_p8  ;;  %s177_s8 = scalar_lea.sflag [#allocation3], %s176_s23 }
  0x1f   : > { %203 = sbr.rel (%p978_p7) target bundleno = 485 (0x1e5), region = 32  ;;  %s1028_s10 = sand.u32 (!%p978_p7), 1, %s878_s13  }
  0x20   : > { %652 = dma.hbm_to_vmem [thread:$0]  (!%p650_p9), %s190_s30, 1024, %s192_s7, %s177_s8, %s897_s5, %s897_s5, %s898_s6  }
  0x21   : > { %s581_s19 = sshll.u32 (!%p978_p7), %s1028_s10, 6  ;;  %s206_s24 = scalar_lea.sflag (!%p978_p7), [#allocation3], %s1028_s10 }
  0x22   : > { %s209_s18 = scalar_lea.vmem (!%p978_p7), [#allocation2], %s581_s19 }
  0x24   : > { %861 = dma.done.wait (%p965_p3), %s206_s24, 1024  }
  0x25   : > { %863 = vsyncadd (%p965_p3), %s206_s24, 4294966272 }
  0x26   : > { %865 = dma.done.wait (%p959_p1), [#allocation6], 1280  }
  0x27   : > { %867 = vsyncadd (%p959_p1), [#allocation6], 4294966016  ;;  %v254_v0 = vld [vmem:[#allocation7 + $0x8] sm:$0xff]  ;;  %v253_v1 = vld [vmem:[#allocation7] sm:$0xff]  ;;  %vm255_vm0 = vcmask 130048   ;;  %vm329_vm1 = vcmask 523264  }
  0x28   : > { %294 = vmatpush.msra.mxu0 %v254_v0  ;;  %620 = vmatpush.msra.mxu3 %v254_v0  ;;  %v245_v2 = vld [vmem:[%s209_s18] sm:$0xff]  ;;  %v250_v3 = vld [vmem:[%s209_s18 + $0x28] sm:$0xff]  ;;  %v251_v5 = vld [vmem:[%s209_s18 + $0x30] sm:$0xff]  ;;  %s584_s20 = sshll.u32 %s1028_s10, 7  ;;  %vm395_vm2 = vcmask 64512   ;;  %s900_s26 = smov 120  }
  0x29   : > { %v246_v4 = vld [vmem:[%s209_s18 + $0x8] sm:$0xff]  ;;  %v247_v6 = vld [vmem:[%s209_s18 + $0x10] sm:$0xff]  ;;  %v252_v7 = vld [vmem:[%s209_s18 + $0x38] sm:$0xff]  ;;  %s1057_s21 = scalar_lea.vmem [#allocation8], %s584_s20  ;;  %s619_s5 = sshll.u32 %s886_s15, 7 }
  0x2a   : > { %295 = vmatpush.msra.mxu0 %v253_v1  ;;  %621 = vmatpush.msra.mxu3 %v253_v1  ;;  %v248_v8 = vld [vmem:[%s209_s18 + $0x18] sm:$0xff]  ;;  %v249_v9 = vld [vmem:[%s209_s18 + $0x20] sm:$0xff]  ;;  %v322_v20 = vld [vmem:[#allocation5 + $0x8] sm:$0xff]  ;;  %s461_s27 = scalar_lea.hbm %s1133_s3, %s619_s5  ;;  %s462_s28 = sshll.u32 %s1057_s21, 4  ;;  %s463_s28 = int_to_ptr.vmem [resolvable:$true] %s462_s28 }
  0x2b   : > { %585 = vmatmul.msk.f32.vlgmr.msra.gmra.mxu0 %vm255_vm0, %v245_v2  ;;  %590 = vmatmul.msk.f32.vlgmr.msra.gmra.mxu3 %vm255_vm0, %v250_v3  ;;  %v321_v18 = vld [vmem:[#allocation5] sm:$0xff]  ;;  %v326_v21 = vld [vmem:[#allocation5 + $0x28] sm:$0xff]  ;;  %v323_v22 = vld [vmem:[#allocation5 + $0x10] sm:$0xff]  ;;  %s464_s29 = sshll.u32 %s461_s27, 4  ;;  %s448_s30 = scalar_lea.sflag [#allocation4], %s1028_s10  ;;  %s465_s29 = int_to_ptr.hbm [resolvable:$true] %s464_s29 }
  0x2c   : > { %v325_v19 = vld [vmem:[#allocation5 + $0x20] sm:$0xff]  ;;  %v327_v23 = vld [vmem:[#allocation5 + $0x30] sm:$0xff]  ;;  %v328_v24 = vld [vmem:[#allocation5 + $0x38] sm:$0xff]  ;;  %s822_s15 = sshra.s32 %s465_s29, 4  ;;  %s828_s19 = scalar_lea.hbm %s1133_s3, 256  ;;  %s823_s15 = int_to_ptr.hbm [resolvable:$true] %s822_s15 }
  0x2d   : > { %v324_v25 = vld [vmem:[#allocation5 + $0x18] sm:$0xff]  ;;  %s824_s4 = scalar_lea.hbm %s823_s15, 128  ;;  %p829_p11 = scmp.lt.s32.totalorder %s823_s15, %s1133_s3 }
  0x2e   : > { %p825_p1 = scmp.ne.s32.totalorder %s823_s15, %s824_s4  ;;  %p830_p12 = scmp.lt.s32.totalorder %s828_s19, %s824_s4 }
  0x30   : > { %p826_p3 = pnand %p825_p1, %p1005_p2  ;;  %p831_p13 = por %p830_p12, %p829_p11 }
  0x32   : > { %p827_p7 = pneg %p826_p3 }
  0x33   : > { %586 = vmatmul.msk.f32.gmra.mxu0 %vm255_vm0, %v246_v4  ;;  %591 = vmatmul.msk.f32.gmra.mxu3 %vm255_vm0, %v251_v5 }
  0x34   : > { %p832_p0 = pnand %p831_p13, %p827_p7 }
  0x3b   : > { %587 = vmatmul.msk.f32.gmra.mxu0 %vm255_vm0, %v247_v6  ;;  %592 = vmatmul.msk.f32.gmra.mxu3 %vm255_vm0, %v252_v7 }
  0x43   : > { %588 = vmatmul.msk.f32.gmra.mxu0 %vm255_vm0, %v248_v8 }
  0x4b   : > { %589 = vmatmul.msk.f32.gmra.mxu0 %vm255_vm0, %v249_v9 }
  0xa8   : > { %v297_v10 = vpop.f32.mrf.mxu0 }
  0xae   : > { %v312_v11 = vpop.f32.mrf.mxu3 }
  0xb0   : > { %v300_v12 = vpop.f32.mrf.mxu0 }
  0xb6   : > { %v315_v13 = vpop.f32.mrf.mxu3 }
  0xb8   : > { %v303_v14 = vpop.f32.mrf.mxu0 }
  0xbe   : > { %v318_v15 = vpop.f32.mrf.mxu3 }
  0xbf   : > { %362 = vmatpush.msra.mxu1 %v318_v15  ;;  %622 = vmatpush.msra.mxu2 %v318_v15 }
  0xc0   : > { %v306_v16 = vpop.f32.mrf.mxu0 }
  0xc1   : > { %363 = vmatpush.msra.mxu1 %v315_v13  ;;  %623 = vmatpush.msra.mxu2 %v315_v13 }
  0xc3   : > { %364 = vmatpush.msra.mxu1 %v312_v11  ;;  %624 = vmatpush.msra.mxu2 %v312_v11 }
  0xc8   : > { %v309_v17 = vpop.f32.mrf.mxu0 }
  0xc9   : > { %365 = vmatpush.msra.mxu1 %v309_v17  ;;  %625 = vmatpush.msra.mxu2 %v309_v17 }
  0xcb   : > { %366 = vmatpush.msra.mxu1 %v306_v16  ;;  %626 = vmatpush.msra.mxu2 %v306_v16 }
  0xcd   : > { %367 = vmatpush.msra.mxu1 %v303_v14  ;;  %627 = vmatpush.msra.mxu2 %v303_v14 }
  0xcf   : > { %368 = vmatpush.msra.mxu1 %v300_v12  ;;  %628 = vmatpush.msra.mxu2 %v300_v12 }
  0xd1   : > { %369 = vmatpush.msra.mxu1 %v297_v10  ;;  %629 = vmatpush.msra.mxu2 %v297_v10 }
  0xd2   : > { %593 = vmatmul.msk.f32.vlgmr.msra.gmra.mxu1 %vm329_vm1, %v321_v18  ;;  %597 = vmatmul.msk.f32.vlgmr.msra.gmra.mxu2 %vm329_vm1, %v325_v19 }
  0xda   : > { %594 = vmatmul.msk.f32.gmra.mxu1 %vm329_vm1, %v322_v20  ;;  %598 = vmatmul.msk.f32.gmra.mxu2 %vm329_vm1, %v326_v21 }
  0xe2   : > { %595 = vmatmul.msk.f32.gmra.mxu1 %vm329_vm1, %v323_v22  ;;  %599 = vmatmul.msk.f32.gmra.mxu2 %vm329_vm1, %v327_v23 }
  0xea   : > { %600 = vmatmul.msk.f32.gmra.mxu2 %vm329_vm1, %v328_v24  ;;  %596 = vmatmul.msk.f32.gmra.mxu1 %vm329_vm1, %v324_v25 }
 0x14f   : > { %v371_v26 = vpop.f32.mrf.mxu1 }
 0x150   : > { %396 = vst.msk [vmem:[%s1057_s21] sm:$0xff] %vm395_vm2, %v371_v26  ;;  %404 = vrot.lane.b32.xlu0 %v371_v26, %s900_s26 }
 0x155   : > { %v383_v27 = vpop.f32.mrf.mxu2 }
 0x156   : > { %398 = vst.msk [vmem:[%s1057_s21 + $0x10] sm:$0xff] %vm395_vm2, %v383_v27  ;;  %408 = vrot.lane.b32.xlu1 %v383_v27, %s900_s26 }
 0x157   : > { %v374_v28 = vpop.f32.mrf.mxu1 }
 0x158   : > { %605 = vst.msk [vmem:[%s1057_s21 + $0x40] sm:$0xff] %vm395_vm2, %v374_v28  ;;  %430 = vrot.lane.b32.xlu2 %v374_v28, %s900_s26 }
 0x15d   : > { %v386_v29 = vpop.f32.mrf.mxu2 }
 0x15e   : > { %607 = vst.msk [vmem:[%s1057_s21 + $0x50] sm:$0xff] %vm395_vm2, %v386_v29 }
 0x15f   : > { %v377_v30 = vpop.f32.mrf.mxu1 }
 0x160   : > { %397 = vst.msk [vmem:[%s1057_s21 + $0x8] sm:$0xff] %vm395_vm2, %v377_v30  ;;  %406 = vrot.lane.b32.xlu0 %v377_v30, %s900_s26 }
 0x165   : > { %v389_v31 = vpop.f32.mrf.mxu2 }
 0x166   : > { %399 = vst.msk [vmem:[%s1057_s21 + $0x18] sm:$0xff] %vm395_vm2, %v389_v31  ;;  %410 = vrot.lane.b32.xlu1 %v389_v31, %s900_s26 }
 0x167   : > { %v380_v32 = vpop.f32.mrf.mxu1 }
 0x168   : > { %434 = vrot.lane.b32.xlu0 %v386_v29, %s900_s26  ;;  %606 = vst.msk [vmem:[%s1057_s21 + $0x48] sm:$0xff] %vm395_vm2, %v380_v32  ;;  %432 = vrot.lane.b32.xlu2 %v380_v32, %s900_s26 }
 0x16d   : > { %v392_v33 = vpop.f32.mrf.mxu2 }
 0x16e   : > { %608 = vst.msk [vmem:[%s1057_s21 + $0x58] sm:$0xff] %vm395_vm2, %v392_v33  ;;  %436 = vrot.lane.b32.xlu1 %v392_v33, %s900_s26 }
 0x1b2   : > { %v431_v34 = vpop.permute.xlu2 %430 }
 0x1b3   : > { %609 = vst.msk [vmem:[%s1057_s21 + $0x60] sm:$0xff] %vm395_vm2, %v431_v34 }
 0x1c2   : > { %v405_v35 = vpop.permute.xlu0 %404  ;;  %v433_v36 = vpop.permute.xlu2 %432 }
 0x1c3   : > { %601 = vst.msk [vmem:[%s1057_s21 + $0x20] sm:$0xff] %vm395_vm2, %v405_v35 }
 0x1c4   : > { %610 = vst.msk [vmem:[%s1057_s21 + $0x68] sm:$0xff] %vm395_vm2, %v433_v36 }
 0x1c8   : > { %v409_v37 = vpop.permute.xlu1 %408 }
 0x1c9   : > { %603 = vst.msk [vmem:[%s1057_s21 + $0x30] sm:$0xff] %vm395_vm2, %v409_v37 }
 0x1d2   : > { %v407_v38 = vpop.permute.xlu0 %406 }
 0x1d3   : > { %602 = vst.msk [vmem:[%s1057_s21 + $0x28] sm:$0xff] %vm395_vm2, %v407_v38 }
 0x1d8   : > { %v411_v39 = vpop.permute.xlu1 %410 }
 0x1d9   : > { %604 = vst.msk [vmem:[%s1057_s21 + $0x38] sm:$0xff] %vm395_vm2, %v411_v39 }
 0x1da   : > { %v435_v40 = vpop.permute.xlu0 %434 }
 0x1db   : > { %611 = vst.msk [vmem:[%s1057_s21 + $0x70] sm:$0xff] %vm395_vm2, %v435_v40 }
 0x1e0   : > { %v437_v41 = vpop.permute.xlu1 %436 }
 0x1e1   : > { %612 = vst.msk [vmem:[%s1057_s21 + $0x78] sm:$0xff] %vm395_vm2, %v437_v41 }
 0x1e2   : > { %835 = shalt.err (!%p832_p0)
}
 0x1e3   : > { %s901_s10 = smov 128   ;;  %s902_s20 = smov 8  }
 0x1e4   : > { %640 = dma.vmem_to_hbm [thread:$0]  (%p1005_p2), %s463_s28, 2048, %s465_s29, %s448_s30, %s901_s10, %s901_s10, %s902_s20  }
 0x1e5 PF: > { %s479_s21 = sand.u32 1, %s874_s12   ;;  %p654_p4 = pnand %p576_p10, %p970_p5 }
 0x1e6   : > { %s480_s26 = scalar_lea.sflag [#allocation4], %s479_s21 }
 0x1e7   : > { %p655_p6 = pneg %p654_p4 }
 0x1e9   : > { %869 = dma.done.wait (%p655_p6), %s480_s26, 2048  }
 0x1ea   : > { %871 = vsyncadd (%p655_p6), %s480_s26, 4294965248  ;;  %s20_s17 = sadd.s32 1, %s894_s17   ;;  %s1139_s12 = smov %s878_s13 }
 0x1eb   : > { %p17_p8 = scmp.ge.s32.totalorder %s20_s17, 4   ;;  %s1140_s13 = smov %s882_s14 }
 0x1ec   : > { %s1141_s14 = smov %s1015_s25  ;;  %s1142_s15 = smov %s890_s16 }
 0x1ed   : > { %s1143_s16 = smov %s1145_s9  ;;  %19 = sbr.rel (!%p17_p8) target bundleno = 7 (0x7), region = 88 }
 0x1f2   :  { %486 = vsyncpa [#allocation3], 1 }
 0x1f3   :  { %488 = vsyncpa [#allocation3 + $0x1], 1 }
 0x1f4   :  { %489 = vsyncpa [#allocation6], 1 }
 0x1f5   :  { %490 = vsyncpa [#allocation4], 1 }
 0x1f6   :  { %492 = vsyncpa [#allocation4 + $0x1], 1 }

</bundles_post_ra>
